<compile_context>
chip_gen: v5e
topology: v5e:2x2
jax: 0.10.0
libtpu: 0.0.40
codegen_flags: <defaults>
</compile_context>

<pallas_src>
from functools import partial

import jax
import jax.numpy as jnp
from jax import lax
from jax.experimental import pallas as pl
from jax.experimental.pallas import tpu as pltpu


# ----------------------------------------------------------------------------
# Fused kernel: one grid step == one block of batches (default: all of them)
# ----------------------------------------------------------------------------
def _temporal_attention_kernel(xf_ref, m_ref, be_ref, ve_ref, o_ref):
    Bb, T, NFP = xf_ref.shape                        # static block shape

    # --- product[b] = xf[b] @ M @ xf[b]^T ------------------------------------
    xf = xf_ref[...]                                 # (Bb, T, NFP)
    xf2 = xf.reshape(Bb * T, NFP)                    # merge leading dims (free)
    t1 = jnp.dot(xf2, m_ref[...],
                 preferred_element_type=jnp.float32)            # (Bb*T, NFP)
    product = lax.dot_general(                       # batched (T,NFP)@(NFP,T)
        t1.reshape(Bb, T, NFP), xf,
        dimension_numbers=(((2,), (2,)), ((0,), (0,))),
        preferred_element_type=jnp.float32)                      # (Bb, T, T)

    # --- sigmoid(product + be)  (EUP exp + reciprocal) ------------------------
    z = product + be_ref[...][None, :, :]
    # exp(-z) may overflow to +inf for very negative z; 1/inf -> 0 is correct.
    s = pl.reciprocal(1.0 + jnp.exp(-z), approx=False)           # (Bb, T, T)

    # --- E[b] = Ve @ s[b]  (batched via broadcast Ve; tiny T) -----------------
    ve_b = jnp.broadcast_to(ve_ref[...], (Bb, T, T))
    e = lax.dot_general(
        ve_b, s,
        dimension_numbers=(((2,), (1,)), ((0,), (0,))),
        preferred_element_type=jnp.float32)                      # (Bb, T, T)

    # --- softmax over dim=1 of (B, T, T) --------------------------------------
    e = e - jnp.max(e, axis=1, keepdims=True)
    p = jnp.exp(e)
    o_ref[...] = p * pl.reciprocal(jnp.sum(p, axis=1, keepdims=True),
                                   approx=False)


# ----------------------------------------------------------------------------
# Wrapper: one jitted dispatch (preprocessing fuses with the pallas_call)
# ----------------------------------------------------------------------------
@partial(jax.jit, static_argnames=("num_batch_blocks",))
def temporal_attention(x, U1, U2, U3, be, Ve, num_batch_blocks=1):
    """x: (B, N, F, T) f32 -> (B, T, T) f32 (softmax over dim=1).

    num_batch_blocks=1  -> fully collapsed grid (best on v5e/v6e, 1 TC).
    num_batch_blocks=2  -> 2-wide "parallel" grid for v7x's 2 TensorCores.
    """
    B, N, F, T = x.shape
    NF = N * F
    NFP = ((NF + 127) // 128) * 128                  # lane-dense (pad to 128s)

    assert B % num_batch_blocks == 0
    Bblk = B // num_batch_blocks

    # Parameter preprocessing:  M[(n,f),(m,g)] = U1[n] * U2[f,m] * U3[g]
    # so that product = xf @ M @ xf^T  ==  (x_u1 @ U2) @ (U3 @ x).
    M = jnp.einsum('n,fm,g->nfmg', U1, U2, U3).reshape(NF, NF)
    Mp = jnp.zeros((NFP, NFP), jnp.float32).at[:NF, :NF].set(M)
    be2 = be.reshape(T, T)

    # Activation layout: xf[b, t, n*F + f] = x[b, n, f, t], zero-padded lanes.
    xf = jnp.transpose(x, (0, 3, 1, 2)).reshape(B, T, NF)
    xf = jnp.pad(xf, ((0, 0), (0, 0), (0, NFP - NF)))

    return pl.pallas_call(
        _temporal_attention_kernel,
        out_shape=jax.ShapeDtypeStruct((B, T, T), jnp.float32),
        grid=(num_batch_blocks,),
        in_specs=[
            pl.BlockSpec((Bblk, T, NFP), lambda g: (g, 0, 0)),   # activations
            pl.BlockSpec((NFP, NFP), lambda g: (0, 0)),          # M (resident)
            pl.BlockSpec((T, T), lambda g: (0, 0)),              # be (resident)
            pl.BlockSpec((T, T), lambda g: (0, 0)),              # Ve (resident)
        ],
        out_specs=pl.BlockSpec((Bblk, T, T), lambda g: (g, 0, 0)),
        compiler_params=pltpu.CompilerParams(
            dimension_semantics=("parallel",)),      # shard blocks over TCs
    )(xf, Mp, be2, Ve)


# ----------------------------------------------------------------------------
# Pure-JAX reference: literal transcription of the PyTorch forward
# ----------------------------------------------------------------------------
def temporal_attention_ref(x, U1, U2, U3, be, Ve):
    xp = jnp.transpose(x, (0, 3, 2, 1))                   # (B, T, F, N)
    x_u1 = jnp.matmul(xp, U1)                             # (B, T, F)
    lhs = jnp.matmul(x_u1, U2)                            # (B, T, N)
    rhs = jnp.einsum('f,bnft->bnt', U3, x)                # (B, N, T)
    product = jnp.matmul(lhs, rhs)                        # (B, T, T)
    E = jnp.matmul(Ve, jax.nn.sigmoid(product + be))      # (B, T, T)
    return jax.nn.softmax(E, axis=1)


if __name__ == "__main__":
    # Small shapes consistent with the module: (batch, vertices, channels, T)
    B, N, F_in, T = 2, 16, 4, 8

    key = jax.random.PRNGKey(0)
    kx, k1, k2, k3, kb, kv = jax.random.split(key, 6)
    x = jax.random.normal(kx, (B, N, F_in, T), dtype=jnp.float32)
    U1 = 0.1 * jax.random.normal(k1, (N,), jnp.float32)
    U2 = 0.1 * jax.random.normal(k2, (F_in, N), jnp.float32)
    U3 = 0.1 * jax.random.normal(k3, (F_in,), jnp.float32)
    be = 0.1 * jax.random.normal(kb, (1, T, T), jnp.float32)
    Ve = 0.1 * jax.random.normal(kv, (T, T), jnp.float32)

    ref = temporal_attention_ref(x, U1, U2, U3, be, Ve)

    # Fully collapsed grid (v5e/v6e path).
    out = jax.block_until_ready(temporal_attention(x, U1, U2, U3, be, Ve))
    assert out.shape == (B, T, T), out.shape
    assert bool(jnp.all(jnp.isfinite(out)))
    assert jnp.allclose(out, ref, rtol=1e-4, atol=1e-5), \
        float(jnp.max(jnp.abs(out - ref)))

    # 2-wide parallel grid (v7x two-TensorCore path) — same results.
    out2 = jax.block_until_ready(
        temporal_attention(x, U1, U2, U3, be, Ve, num_batch_blocks=2))
    assert jnp.allclose(out2, ref, rtol=1e-4, atol=1e-5), \
        float(jnp.max(jnp.abs(out2 - ref)))

    print("KERNEL_OK")
</pallas_src>

<mosaic_0001>
module attributes {stable_mosaic.version = 11 : i64} {
  func.func @_temporal_attention_kernel(%arg0: i32, %arg1: memref<2x8x128xf32, #tpu.memory_space<vmem>>, %arg2: memref<128x128xf32, #tpu.memory_space<vmem>>, %arg3: memref<8x8xf32, #tpu.memory_space<vmem>>, %arg4: memref<8x8xf32, #tpu.memory_space<vmem>>, %arg5: memref<2x8x8xf32, #tpu.memory_space<vmem>>) attributes {dimension_semantics = [#tpu.dimension_semantics<parallel>], iteration_bounds = array<i64: 1>, scalar_prefetch = 0 : i64, scratch_operands = 0 : i64, tpu.core_type = #tpu.core_type<tc>, window_params = [{transform_indices = @transform_0, window_bounds = array<i64: 2, 8, 128>}, {pipeline_mode = #tpu.pipeline_mode<synchronous>, transform_indices = @transform_1, window_bounds = array<i64: 128, 128>}, {pipeline_mode = #tpu.pipeline_mode<synchronous>, transform_indices = @transform_2, window_bounds = array<i64: 8, 8>}, {pipeline_mode = #tpu.pipeline_mode<synchronous>, transform_indices = @transform_3, window_bounds = array<i64: 8, 8>}, {transform_indices = @transform_4, window_bounds = array<i64: 2, 8, 8>}]} {
    %c0 = arith.constant 0 : index
    %c0_0 = arith.constant 0 : index
    %c0_1 = arith.constant 0 : index
    %0 = vector.load %arg1[%c0, %c0_0, %c0_1] : memref<2x8x128xf32, #tpu.memory_space<vmem>>, vector<2x8x128xf32>
    %1 = vector.shape_cast %0 : vector<2x8x128xf32> to vector<16x128xf32>
    %c0_2 = arith.constant 0 : index
    %c0_3 = arith.constant 0 : index
    %2 = vector.load %arg2[%c0_2, %c0_3] : memref<128x128xf32, #tpu.memory_space<vmem>>, vector<128x128xf32>
    %cst = arith.constant dense<0.000000e+00> : vector<16x128xf32>
    %3 = tpu.matmul %1, %2, %cst {dimension_numbers = #tpu.dot_dimension_numbers<[1], [0], [0], [1], [0, 0, 1, 1], [], []>} : vector<16x128xf32>, vector<128x128xf32>, vector<16x128xf32> -> vector<16x128xf32>
    %4 = vector.shape_cast %3 : vector<16x128xf32> to vector<2x8x128xf32>
    %cst_4 = arith.constant dense<0.000000e+00> : vector<2x8x8xf32>
    %5 = tpu.matmul %4, %0, %cst_4 {dimension_numbers = #tpu.dot_dimension_numbers<[2], [2], [1], [1], [0, 0, 0, 1, 1, 1], [0], [0]>} : vector<2x8x128xf32>, vector<2x8x128xf32>, vector<2x8x8xf32> -> vector<2x8x8xf32>
    %c0_5 = arith.constant 0 : index
    %c0_6 = arith.constant 0 : index
    %6 = vector.load %arg3[%c0_5, %c0_6] : memref<8x8xf32, #tpu.memory_space<vmem>>, vector<8x8xf32>
    %7 = vector.shape_cast %6 : vector<8x8xf32> to vector<1x8x8xf32>
    %8 = vector.broadcast %7 : vector<1x8x8xf32> to vector<2x8x8xf32>
    %9 = arith.addf %5, %8 : vector<2x8x8xf32>
    %cst_7 = arith.constant 0.000000e+00 : f32
    %10 = vector.broadcast %cst_7 : f32 to vector<2x8x8xf32>
    %11 = arith.subf %10, %9 : vector<2x8x8xf32>
    %12 = math.exp %11 : vector<2x8x8xf32>
    %cst_8 = arith.constant 1.000000e+00 : f32
    %13 = vector.broadcast %cst_8 : f32 to vector<2x8x8xf32>
    %14 = arith.addf %13, %12 : vector<2x8x8xf32>
    %15 = tpu.reciprocal %14 : vector<2x8x8xf32> -> vector<2x8x8xf32>
    %c0_9 = arith.constant 0 : index
    %c0_10 = arith.constant 0 : index
    %16 = vector.load %arg4[%c0_9, %c0_10] : memref<8x8xf32, #tpu.memory_space<vmem>>, vector<8x8xf32>
    %17 = vector.shape_cast %16 : vector<8x8xf32> to vector<1x8x8xf32>
    %18 = vector.broadcast %17 : vector<1x8x8xf32> to vector<2x8x8xf32>
    %cst_11 = arith.constant dense<0.000000e+00> : vector<2x8x8xf32>
    %19 = tpu.matmul %18, %15, %cst_11 {dimension_numbers = #tpu.dot_dimension_numbers<[2], [1], [1], [2], [0, 0, 0, 1, 1, 2], [0], [0]>} : vector<2x8x8xf32>, vector<2x8x8xf32>, vector<2x8x8xf32> -> vector<2x8x8xf32>
    %cst_12 = arith.constant dense<0xFF800000> : vector<2x8xf32>
    %20 = vector.multi_reduction <maximumf>, %19, %cst_12 [1] : vector<2x8x8xf32> to vector<2x8xf32>
    %21 = vector.shape_cast %20 : vector<2x8xf32> to vector<2x1x8xf32>
    %22 = vector.broadcast %21 : vector<2x1x8xf32> to vector<2x8x8xf32>
    %23 = arith.subf %19, %22 : vector<2x8x8xf32>
    %24 = math.exp %23 : vector<2x8x8xf32>
    %cst_13 = arith.constant dense<0.000000e+00> : vector<2x8xf32>
    %25 = vector.multi_reduction <add>, %24, %cst_13 [1] : vector<2x8x8xf32> to vector<2x8xf32>
    %26 = vector.shape_cast %25 : vector<2x8xf32> to vector<2x1x8xf32>
    %27 = tpu.reciprocal %26 : vector<2x1x8xf32> -> vector<2x1x8xf32>
    %28 = vector.broadcast %27 : vector<2x1x8xf32> to vector<2x8x8xf32>
    %29 = arith.mulf %24, %28 : vector<2x8x8xf32>
    %c0_14 = arith.constant 0 : index
    %c0_15 = arith.constant 0 : index
    %c0_16 = arith.constant 0 : index
    %30 = vector.load %arg5[%c0_14, %c0_15, %c0_16] : memref<2x8x8xf32, #tpu.memory_space<vmem>>, vector<2x8x8xf32>
    tpu.vector_store %arg5[%c0_14, %c0_15, %c0_16], %29 {strides = array<i32>} : memref<2x8x8xf32, #tpu.memory_space<vmem>>, vector<2x8x8xf32>,
    return
  }
  func.func @transform_0(%arg0: i32) -> (i32, i32, i32) {
    %c0_i32 = arith.constant 0 : i32
    %c0_i32_0 = arith.constant 0 : i32
    %c0_i32_1 = arith.constant 0 : i32
    return %arg0, %c0_i32, %c0_i32_0 : i32, i32, i32
  }
  func.func @transform_1(%arg0: i32) -> (i32, i32) {
    %c0_i32 = arith.constant 0 : i32
    %c0_i32_0 = arith.constant 0 : i32
    %c0_i32_1 = arith.constant 0 : i32
    return %c0_i32, %c0_i32_0 : i32, i32
  }
  func.func @transform_2(%arg0: i32) -> (i32, i32) {
    %c0_i32 = arith.constant 0 : i32
    %c0_i32_0 = arith.constant 0 : i32
    %c0_i32_1 = arith.constant 0 : i32
    return %c0_i32, %c0_i32_0 : i32, i32
  }
  func.func @transform_3(%arg0: i32) -> (i32, i32) {
    %c0_i32 = arith.constant 0 : i32
    %c0_i32_0 = arith.constant 0 : i32
    %c0_i32_1 = arith.constant 0 : i32
    return %c0_i32, %c0_i32_0 : i32, i32
  }
  func.func @transform_4(%arg0: i32) -> (i32, i32, i32) {
    %c0_i32 = arith.constant 0 : i32
    %c0_i32_0 = arith.constant 0 : i32
    %c0_i32_1 = arith.constant 0 : i32
    return %arg0, %c0_i32, %c0_i32_0 : i32, i32, i32
  }
}

</mosaic_0001>

<bundles_post_ra>
// kernel: temporal_attention.1
= control target key start
LH: loop header
LB: loop body
LE: loop exit
PB: predicated region body
PF: predicated region fallthrough
CT: control target
= control target key end

     0   :  { %s411_s0 = inlined_call_operand.vmem [shape: f32[2,8,128], index: 0, kind: input, shape index: {}]   ;;  %s412_s1 = inlined_call_operand.vmem [shape: f32[128,128], index: 1, kind: input, shape index: {}]   ;;  %s413_s2 = inlined_call_operand.vmem [shape: f32[8,8], index: 2, kind: input, shape index: {}]   ;;  %s414_s3 = inlined_call_operand.vmem [shape: f32[8,8], index: 3, kind: input, shape index: {}]   ;;  %s415_s4 = inlined_call_operand.hbm [shape: f32[2,8,8], index: 4, kind: output, shape index: {}]  }
   0x1   :  { %v35_v0 = vld [vmem:[%s412_s1 + $0x78] sm:$0xff]  ;;  %v34_v1 = vld [vmem:[%s412_s1 + $0x70] sm:$0xff]  ;;  %v33_v2 = vld [vmem:[%s412_s1 + $0x68] sm:$0xff] }
   0x2   :  { %36 = vmatpush.msra.mxu0 %v35_v0  ;;  %v32_v3 = vld [vmem:[%s412_s1 + $0x60] sm:$0xff]  ;;  %v19_v5 = vld [vmem:[%s411_s0 + $0x8] sm:$0xff]  ;;  %v31_v6 = vld [vmem:[%s412_s1 + $0x58] sm:$0xff] }
   0x3   :  { %v18_v4 = vld [vmem:[%s411_s0] sm:$0xff]  ;;  %95 = vmatpush.xpose.msra.mxu2 %v19_v5 }
   0x4   :  { %37 = vmatpush.msra.mxu0 %v34_v1  ;;  %75 = vmatpush.xpose.msra.mxu1 %v18_v4 }
   0x6   :  { %38 = vmatpush.msra.mxu0 %v33_v2 }
   0x7   :  { %9 = vsyncpa [#allocation3], 0  ;;  %v30_v7 = vld [vmem:[%s412_s1 + $0x50] sm:$0xff]  ;;  %v29_v8 = vld [vmem:[%s412_s1 + $0x48] sm:$0xff]  ;;  %vm137_vm4 = vcmask 64512   ;;  %s253_s29 = sshll.u32 %s415_s4, 4  ;;  %s254_s29 = int_to_ptr.hbm [resolvable:$true] %s253_s29 }
   0x8   :  { %39 = vmatpush.msra.mxu0 %v32_v3  ;;  %v28_v9 = vld [vmem:[%s412_s1 + $0x40] sm:$0xff]  ;;  %v27_v10 = vld [vmem:[%s412_s1 + $0x38] sm:$0xff]  ;;  %v26_v11 = vld [vmem:[%s412_s1 + $0x30] sm:$0xff]  ;;  %s313_s30 = smov 128   ;;  %s314_s5 = smov 8  }
   0x9   :  { %v25_v12 = vld [vmem:[%s412_s1 + $0x28] sm:$0xff]  ;;  %v24_v13 = vld [vmem:[%s412_s1 + $0x20] sm:$0xff]  ;;  %v23_v14 = vld [vmem:[%s412_s1 + $0x18] sm:$0xff] }
   0xa   :  { %40 = vmatpush.msra.mxu0 %v31_v6  ;;  %v22_v15 = vld [vmem:[%s412_s1 + $0x10] sm:$0xff]  ;;  %v21_v16 = vld [vmem:[%s412_s1 + $0x8] sm:$0xff]  ;;  %v20_v17 = vld [vmem:[%s412_s1] sm:$0xff] }
   0xb   :  { %v59_v20 = vld [vmem:[%s413_s2] sm:$0xff] }
   0xc   :  { %41 = vmatpush.msra.mxu0 %v30_v7  ;;  %v136_v42 = vld [vmem:[%s414_s3] sm:$0xff]  ;;  %s312_s3 = smov [#allocation2]  }
   0xd   :  { %s251_s26 = sshll.u32 %s312_s3, 4  ;;  %s252_s26 = int_to_ptr.vmem [resolvable:$true] %s251_s26 }
   0xe   :  { %42 = vmatpush.msra.mxu0 %v29_v8 }
  0x10   :  { %43 = vmatpush.msra.mxu0 %v28_v9 }
  0x12   :  { %44 = vmatpush.msra.mxu0 %v27_v10 }
  0x14   :  { %45 = vmatpush.msra.mxu0 %v26_v11 }
  0x16   :  { %46 = vmatpush.msra.mxu0 %v25_v12 }
  0x18   :  { %47 = vmatpush.msra.mxu0 %v24_v13 }
  0x1a   :  { %48 = vmatpush.msra.mxu0 %v23_v14 }
  0x1c   :  { %49 = vmatpush.msra.mxu0 %v22_v15 }
  0x1e   :  { %50 = vmatpush.msra.mxu0 %v21_v16 }
  0x20   :  { %51 = vmatpush.msra.mxu0 %v20_v17 }
  0x21   :  { %52 = vmatmul.f32.vlgmr.msra.gmra.mxu0 %v18_v4 }
  0x29   :  { %55 = vmatmul.f32.gmra.mxu0 %v19_v5 }
  0x9e   :  { %v53_v18 = vpop.f32.mrf.mxu0 }
  0x9f   :  { %76 = vmatmul.f32.vlgmr.msra.gmra.mxu1 %v53_v18 }
  0xa6   :  { %v56_v19 = vpop.f32.mrf.mxu0 }
  0xa7   :  { %96 = vmatmul.f32.vlgmr.msra.gmra.mxu2 %v56_v19 }
 0x11c   :  { %v77_v21 = vpop.f32.mrf.mxu1 }
 0x11d   :  { %v78_v22 = vadd.f32 %v77_v21, %v59_v20 }
 0x11f   :  { %v100_v23 = vsub.f32 0.0, %v78_v22 }
 0x121   :  { %v102_v24 = vmul.f32 1.442695, %v100_v23 }
 0x123   :  { %270 = vpow2.f32 %v102_v24 }
 0x129   :  { %v271_v25 = vpop.eup %270 }
 0x12a   :  { %v106_v26 = vadd.f32 1.0, %v271_v25  ;;  %v97_v27 = vpop.f32.mrf.mxu2 }
 0x12b   :  { %v98_v28 = vadd.f32 %v97_v27, %v59_v20 }
 0x12c   :  { %272 = vrcp.f32 %v106_v26  ;;  %v119_v34 = vand.u32 2147483648, %v106_v26  ;;  %v117_v37 = vand.u32 2147483647, %v106_v26  ;;  %vm113_vm1 = vweird.f32 %v106_v26 }
 0x12d   :  { %v101_v29 = vsub.f32 0.0, %v98_v28 }
 0x12e   :  { %v120_v40 = vor.u32 1.1754944e-38, %v119_v34  ;;  %vm118_vm3 = vcmp.eq.f32.partialorder %v117_v37, 8.507059e+37 }
 0x12f   :  { %v104_v30 = vmul.f32 1.442695, %v101_v29 }
 0x131   :  { %274 = vpow2.f32 %v104_v30 }
 0x132   :  { %v273_v31 = vpop.eup %272 }
 0x133   :  { %v109_v32 = vmul.f32 %v273_v31, %v106_v26  ;;  %vm114_vm0 = vweird.f32 %v273_v31 }
 0x134   :  { %vm115_vm2 = vmor %vm113_vm1, %vm114_vm0 }
 0x135   :  { %v110_v33 = vsub.f32 1.0, %v109_v32 }
 0x137   :  { %v275_v35 = vpop.eup %274  ;;  %v111_v36 = vmul.f32 %v273_v31, %v110_v33 }
 0x138   :  { %v107_v38 = vadd.f32 1.0, %v275_v35 }
 0x139   :  { %v112_v39 = vadd.f32 %v273_v31, %v111_v36 }
 0x13a   :  { %276 = vrcp.f32 %v107_v38  ;;  %v133_v47 = vand.u32 2147483648, %v107_v38  ;;  %v131_v49 = vand.u32 2147483647, %v107_v38  ;;  %vm127_vm6 = vweird.f32 %v107_v38 }
 0x13b   :  { %v116_v41 = vsel %vm115_vm2, %v273_v31, %v112_v39 }
 0x13c   :  { %v121_v43 = vsel %vm118_vm3, %v120_v40, %v116_v41  ;;  %v134_v51 = vor.u32 1.1754944e-38, %v133_v47  ;;  %vm132_vm8 = vcmp.eq.f32.partialorder %v131_v49, 8.507059e+37 }
 0x13d   :  { %156 = vmatpush.msra.mxu3 %v121_v43 }
 0x13e   :  { %265 = vmatmul.msk.f32.vlgmr.msra.gmra.mxu3 %vm137_vm4, %v136_v42 }
 0x140   :  { %v277_v44 = vpop.eup %276 }
 0x141   :  { %v123_v45 = vmul.f32 %v277_v44, %v107_v38  ;;  %vm128_vm5 = vweird.f32 %v277_v44 }
 0x142   :  { %vm129_vm7 = vmor %vm127_vm6, %vm128_vm5 }
 0x143   :  { %v124_v46 = vsub.f32 1.0, %v123_v45 }
 0x145   :  { %v125_v48 = vmul.f32 %v277_v44, %v124_v46 }
 0x147   :  { %v126_v50 = vadd.f32 %v277_v44, %v125_v48 }
 0x149   :  { %v130_v52 = vsel %vm129_vm7, %v277_v44, %v126_v50 }
 0x14a   :  { %v135_v53 = vsel %vm132_vm8, %v134_v51, %v130_v52 }
 0x14b   :  { %176 = vmatpush.msrb.mxu3 %v135_v53 }
 0x14c   :  { %266 = vmatmul.msk.f32.vlgmr.msrb.gmra.mxu3 %vm137_vm4, %v136_v42 }
 0x1c1   :  { %v158_v54 = vpop.f32.mrf.mxu3 }
 0x1c2   :  { %v181_v55 = vsel %vm137_vm4, %v158_v54, -inf }
 0x1c3   :  { %v182_v56 = vrot.slane %v181_v55, 4 }
 0x1c5   :  { %v183_v57 = vmax.f32 %v181_v55, %v182_v56 }
 0x1c7   :  { %v184_v58 = vrot.slane %v183_v57, 2 }
 0x1c9   :  { %v185_v59 = vmax.f32 %v183_v57, %v184_v58 }
 0x1cb   :  { %v186_v60 = vrot.slane %v185_v59, 1 }
 0x1cd   :  { %v187_v61 = vmax.f32 %v185_v59, %v186_v60 }
 0x1cf   :  { %v195_v62 = vsub.f32 %v158_v54, %v187_v61  ;;  %v178_v63 = vpop.f32.mrf.mxu3 }
 0x1d0   :  { %v188_v0 = vsel %vm137_vm4, %v178_v63, -inf }
 0x1d1   :  { %v197_v1 = vmul.f32 1.442695, %v195_v62  ;;  %v189_v2 = vrot.slane %v188_v0, 4 }
 0x1d3   :  { %278 = vpow2.f32 %v197_v1  ;;  %v190_v3 = vmax.f32 %v188_v0, %v189_v2 }
 0x1d5   :  { %v191_v4 = vrot.slane %v190_v3, 2 }
 0x1d7   :  { %v192_v5 = vmax.f32 %v190_v3, %v191_v4 }
 0x1d9   :  { %v279_v6 = vpop.eup %278  ;;  %v193_v7 = vrot.slane %v192_v5, 1 }
 0x1da   :  { %v201_v8 = vsel %vm137_vm4, %v279_v6, 0.0 }
 0x1db   :  { %v202_v9 = vrot.slane %v201_v8, 4  ;;  %v194_v10 = vmax.f32 %v192_v5, %v193_v7 }
 0x1dd   :  { %v203_v11 = vadd.f32 %v202_v9, %v201_v8  ;;  %v196_v12 = vsub.f32 %v178_v63, %v194_v10 }
 0x1df   :  { %v204_v13 = vrot.slane %v203_v11, 2  ;;  %v199_v14 = vmul.f32 1.442695, %v196_v12 }
 0x1e1   :  { %v205_v15 = vadd.f32 %v204_v13, %v203_v11  ;;  %280 = vpow2.f32 %v199_v14 }
 0x1e3   :  { %v206_v16 = vrot.slane %v205_v15, 1 }
 0x1e5   :  { %v207_v17 = vadd.f32 %v206_v16, %v205_v15 }
 0x1e7   :  { %v281_v18 = vpop.eup %280  ;;  %282 = vrcp.f32 %v207_v17  ;;  %v226_v27 = vand.u32 2147483648, %v207_v17  ;;  %v224_v30 = vand.u32 2147483647, %v207_v17  ;;  %vm220_vm10 = vweird.f32 %v207_v17 }
 0x1e8   :  { %v208_v19 = vsel %vm137_vm4, %v281_v18, 0.0 }
 0x1e9   :  { %v209_v20 = vrot.slane %v208_v19, 4  ;;  %v227_v33 = vor.u32 1.1754944e-38, %v226_v27  ;;  %vm225_vm12 = vcmp.eq.f32.partialorder %v224_v30, 8.507059e+37 }
 0x1eb   :  { %v210_v21 = vadd.f32 %v209_v20, %v208_v19 }
 0x1ed   :  { %v283_v22 = vpop.eup %282  ;;  %v211_v23 = vrot.slane %v210_v21, 2 }
 0x1ee   :  { %v216_v24 = vmul.f32 %v283_v22, %v207_v17  ;;  %vm221_vm9 = vweird.f32 %v283_v22 }
 0x1ef   :  { %v212_v25 = vadd.f32 %v211_v23, %v210_v21  ;;  %vm222_vm11 = vmor %vm220_vm10, %vm221_vm9 }
 0x1f0   :  { %v217_v26 = vsub.f32 1.0, %v216_v24 }
 0x1f1   :  { %v213_v28 = vrot.slane %v212_v25, 1 }
 0x1f2   :  { %v218_v29 = vmul.f32 %v283_v22, %v217_v26 }
 0x1f3   :  { %v214_v31 = vadd.f32 %v213_v28, %v212_v25 }
 0x1f4   :  { %v219_v32 = vadd.f32 %v283_v22, %v218_v29 }
 0x1f5   :  { %284 = vrcp.f32 %v214_v31  ;;  %v240_v40 = vand.u32 2147483648, %v214_v31  ;;  %v238_v42 = vand.u32 2147483647, %v214_v31  ;;  %vm234_vm14 = vweird.f32 %v214_v31 }
 0x1f6   :  { %v223_v34 = vsel %vm222_vm11, %v283_v22, %v219_v32 }
 0x1f7   :  { %v228_v35 = vsel %vm225_vm12, %v227_v33, %v223_v34  ;;  %v241_v44 = vor.u32 1.1754944e-38, %v240_v40  ;;  %vm239_vm0 = vcmp.eq.f32.partialorder %v238_v42, 8.507059e+37 }
 0x1f8   :  { %v243_v36 = vmul.f32 %v279_v6, %v228_v35 }
 0x1fa   :  { %245 = vst.msk [vmem:[#allocation2] sm:$0xff] %vm137_vm4, %v243_v36 }
 0x1fb   :  { %v285_v37 = vpop.eup %284 }
 0x1fc   :  { %v230_v38 = vmul.f32 %v285_v37, %v214_v31  ;;  %vm235_vm13 = vweird.f32 %v285_v37 }
 0x1fd   :  { %vm236_vm15 = vmor %vm234_vm14, %vm235_vm13 }
 0x1fe   :  { %v231_v39 = vsub.f32 1.0, %v230_v38 }
 0x200   :  { %v232_v41 = vmul.f32 %v285_v37, %v231_v39 }
 0x202   :  { %v233_v43 = vadd.f32 %v285_v37, %v232_v41 }
 0x204   :  { %v237_v45 = vsel %vm236_vm15, %v285_v37, %v233_v43 }
 0x205   :  { %v242_v46 = vsel %vm239_vm0, %v241_v44, %v237_v45 }
 0x206   :  { %v244_v47 = vmul.f32 %v281_v18, %v242_v46 }
 0x208   :  { %246 = vst.msk [vmem:[#allocation2 + $0x8] sm:$0xff] %vm137_vm4, %v244_v47 }
 0x209   :  { %259 = dma.vmem_to_hbm [thread:$0]  %s252_s26, 256, %s254_s29, [#allocation3], %s313_s30, %s313_s30, %s314_s5  }
 0x20a   :  { %310 = dma.done.wait [#allocation3], 256  }
 0x20b   :  { %311 = vsyncadd [#allocation3], 4294967040 }
 0x20c   :  { %264 = vsyncpa [#allocation3], 1 }

</bundles_post_ra>
